<compile_context>
chip_gen: v7x
topology: tpu7x:2x2x1
jax: 0.10.0
libtpu: 0.0.40
codegen_flags: <defaults>
</compile_context>

<pallas_src>
import jax
import jax.numpy as jnp
from jax import lax
from jax.experimental import pallas as pl
from jax.experimental.pallas import tpu as pltpu

_LANE = 128
_SUBLANE = 8
_VMEM_LIMIT = 32 * 1024 * 1024


def _cdiv(a, b):
    return (a + b - 1) // b


def _round_up(x, m):
    return ((x + m - 1) // m) * m


# --------------------------------------------------------------------------
# Path 1: constants is None  ->  mean((input - target)^2)
# --------------------------------------------------------------------------
def _mse_sum(x, t, *, row_tile_target=8192, num_chunks_target=2):
    """sum((x - t)^2) over all elements via a lane-dense tiled reduction."""
    n = x.size
    xf = x.reshape(-1)
    tf = t.reshape(-1)

    rem = n % _LANE
    if rem:
        # Rare fallback (copies): only hit when numel is not a 128 multiple.
        xf = jnp.pad(xf, (0, _LANE - rem))
        tf = jnp.pad(tf, (0, _LANE - rem))
    rows = xf.size // _LANE
    x2 = xf.reshape(rows, _LANE)        # free reshape (contiguous)
    t2 = tf.reshape(rows, _LANE)

    row_tile = min(_round_up(row_tile_target, _SUBLANE),
                   _round_up(rows, _SUBLANE))
    total_tiles = _cdiv(rows, row_tile)
    # Guarantee >=2 parallel chunks (v7x has two TensorCores) when possible.
    if total_tiles < num_chunks_target and rows > _SUBLANE:
        row_tile = max(_SUBLANE,
                       _round_up(_cdiv(rows, num_chunks_target), _SUBLANE))
        total_tiles = _cdiv(rows, row_tile)
    num_chunks = max(1, min(num_chunks_target, total_tiles))
    num_inner = _cdiv(total_tiles, num_chunks)
    needs_mask = num_chunks * num_inner * row_tile != rows

    def kernel(x_ref, t_ref, acc_ref):
        i = pl.program_id(1)

        @pl.when(i == 0)
        def _():
            acc_ref[...] = jnp.zeros_like(acc_ref)

        d = x_ref[...].astype(jnp.float32) - t_ref[...].astype(jnp.float32)
        if needs_mask:
            # Rows past the valid extent (partial last tile) or belonging to
            # a duplicated, clamped tile contribute exactly zero.
            tile_idx = pl.program_id(0) * num_inner + i
            row_ids = tile_idx * row_tile + lax.broadcasted_iota(
                jnp.int32, (row_tile, 1), 0)
            d = jnp.where(row_ids < rows, d, 0.0)
        sq = d * d
        # Summing axis 0 of (row_tile//8, 8, 128) is pure elementwise vreg
        # adds (this reshape matches the native (8,128) tiling, no relayout);
        # no cross-lane reduce per step.
        partial = jnp.sum(sq.reshape(-1, _SUBLANE, _LANE), axis=0)
        acc_ref[...] += partial.reshape(acc_ref.shape)

    in_blk = pl.BlockSpec(
        (row_tile, _LANE),
        lambda c, i: (jnp.minimum(c * num_inner + i, total_tiles - 1), 0))
    out_blk = pl.BlockSpec((1, _SUBLANE, _LANE), lambda c, i: (c, 0, 0))

    partials = pl.pallas_call(
        kernel,
        out_shape=jax.ShapeDtypeStruct((num_chunks, _SUBLANE, _LANE),
                                       jnp.float32),
        grid=(num_chunks, num_inner),
        in_specs=[in_blk, in_blk],
        out_specs=out_blk,
        compiler_params=pltpu.CompilerParams(
            dimension_semantics=("parallel", "arbitrary"),
            vmem_limit_bytes=_VMEM_LIMIT),
    )(x2, t2)
    return jnp.sum(partials)


# --------------------------------------------------------------------------
# Path 2: constants given  ->  two sums needed (d = input - target):
#   sum1 = sum(constants * d^2)
#   sum2 = sum over (b,h,w) of [ c0*d0^2 + sum_{i>0} c_i*(d_i - d_{i-1})^2 ]
# --------------------------------------------------------------------------
def _weighted_sums(x, t, consts, *, block_bytes_target=4 * 1024 * 1024,
                   num_hw_chunks_target=2):
    B, C, H, W = x.shape
    hw = H * W

    # Fold batch items into the channel axis to fill the 8-sublane tile.
    k = 1
    if C < _SUBLANE:
        k = _SUBLANE // C
        while k > 1 and B % k:
            k -= 1
    b_eff, cg = B // k, k * C

    x3 = x.reshape(b_eff, cg, hw)       # free reshapes (row-major regroup)
    t3 = t.reshape(b_eff, cg, hw)
    c3 = consts.reshape(b_eff, cg, hw)

    # Lane-dense spatial tile sized off the *physical* (sublane-padded) block.
    sub_phys = _round_up(cg, _SUBLANE)
    hw_tile = (block_bytes_target // 4) // sub_phys
    hw_tile = max(_LANE, (hw_tile // _LANE) * _LANE)
    hw_tile = min(hw_tile, _round_up(hw, _LANE))

    total_tiles = _cdiv(hw, hw_tile)
    # Guarantee >=2 parallel grid iterations (v7x: two TensorCores).
    if b_eff * min(num_hw_chunks_target, total_tiles) < 2 and hw >= 2 * _LANE:
        hw_tile = max(_LANE, ((hw // 2) // _LANE) * _LANE)
        total_tiles = _cdiv(hw, hw_tile)
    num_hw_chunks = max(1, min(num_hw_chunks_target, total_tiles))
    num_inner = _cdiv(total_tiles, num_hw_chunks)
    needs_mask = num_hw_chunks * num_inner * hw_tile != hw

    def kernel(x_ref, t_ref, c_ref, out1_ref, out2_ref):
        i = pl.program_id(2)

        @pl.when(i == 0)
        def _():
            out1_ref[...] = jnp.zeros_like(out1_ref)
            out2_ref[...] = jnp.zeros_like(out2_ref)

        xb = x_ref[...].astype(jnp.float32)     # (1, cg, hw_tile)
        tb = t_ref[...].astype(jnp.float32)
        cb = c_ref[...].astype(jnp.float32)
        diff = xb - tb
        if needs_mask:
            # Mask BOTH terms: zero the diff and the constants so garbage in
            # partial / duplicated tiles cannot poison either sum.
            tile_idx = pl.program_id(1) * num_inner + i
            col = tile_idx * hw_tile + lax.broadcasted_iota(
                jnp.int32, (1, 1, hw_tile), 2)
            valid = col < hw
            diff = jnp.where(valid, diff, 0.0)
            cb = jnp.where(valid, cb, 0.0)

        # Term 1: constants-weighted squared error.
        s1 = jnp.sum(cb * diff * diff)

        # Term 2: channel-difference recurrence. sdiff = diff shifted by one
        # channel (zero fill); every folded-batch head channel is zeroed so
        # the recurrence never crosses a batch boundary.
        if cg > 1:
            sdiff = jnp.concatenate(
                [jnp.zeros_like(diff[:, :1, :]), diff[:, :-1, :]], axis=1)
            if C < cg:
                ch = lax.broadcasted_iota(jnp.int32, (1, cg, 1), 1)
                is_head = ch == 0
                for g in range(1, k):
                    is_head = jnp.logical_or(is_head, ch == g * C)
                sdiff = jnp.where(is_head, 0.0, sdiff)
            dd = diff - sdiff
        else:
            dd = diff
        s2 = jnp.sum(cb * dd * dd)

        # One cross-lane reduce per term per step (XLU slot, free when the
        # kernel is HBM-bound) into tiny block-resident scalar accumulators.
        out1_ref[...] += s1.reshape(out1_ref.shape)
        out2_ref[...] += s2.reshape(out2_ref.shape)

    in_blk = pl.BlockSpec(
        (1, cg, hw_tile),
        lambda b, hc, i: (b, 0,
                          jnp.minimum(hc * num_inner + i, total_tiles - 1)))
    out_blk = pl.BlockSpec((1, 1, 1, 1), lambda b, hc, i: (b, hc, 0, 0))
    out_sd = jax.ShapeDtypeStruct((b_eff, num_hw_chunks, 1, 1), jnp.float32)

    p1, p2 = pl.pallas_call(
        kernel,
        out_shape=(out_sd, out_sd),
        grid=(b_eff, num_hw_chunks, num_inner),
        in_specs=[in_blk, in_blk, in_blk],
        out_specs=[out_blk, out_blk],
        compiler_params=pltpu.CompilerParams(
            dimension_semantics=("parallel", "parallel", "arbitrary"),
            vmem_limit_bytes=_VMEM_LIMIT),
    )(x3, t3, c3)
    return jnp.sum(p1), jnp.sum(p2)


# --------------------------------------------------------------------------
# Public wrapper mirroring CustomSquareLoss.forward
# --------------------------------------------------------------------------
def custom_square_loss(inp, target, constants=None, *,
                       loss_weight=1.0, loss2_weight=1.0):
    n_total = inp.size
    if constants is None:
        # PyTorch module returns plain MSE (no weighting) in this branch.
        return _mse_sum(inp, target) / n_total

    s1, s2 = _weighted_sums(inp, target, constants)
    loss = s1 / n_total                 # mean(constants * (in - t)^2)
    loss2 = s2 / n_total                # mean(loss2 / C) over (B, H, W)
    return loss * loss_weight + loss2 * loss2_weight


def _reference(inp, target, constants, loss_weight, loss2_weight):
    """Pure-JAX reference mirroring the PyTorch forward."""
    if constants is None:
        return jnp.mean((inp - target) ** 2)
    loss = jnp.mean(((inp - target) ** 2) * constants)
    C = inp.shape[1]
    loss2 = constants[:, 0, :, :] * (inp[:, 0, :, :] - target[:, 0, :, :]) ** 2
    for i in range(1, C):
        loss2 = loss2 + constants[:, i, :, :] * (
            inp[:, i, :, :] - inp[:, i - 1, :, :]
            - target[:, i, :, :] + target[:, i - 1, :, :]) ** 2
    loss2 = jnp.mean(loss2 / C)
    return loss * loss_weight + loss2 * loss2_weight


if __name__ == "__main__":
    key = jax.random.PRNGKey(0)
    k1, k2, k3 = jax.random.split(key, 3)

    B, C, H, W = 2, 4, 16, 16
    x = jax.random.normal(k1, (B, C, H, W), dtype=jnp.float32)
    y = jax.random.normal(k2, (B, C, H, W), dtype=jnp.float32)
    consts = jax.random.uniform(k3, (B, C, H, W), dtype=jnp.float32)

    loss_weight, loss2_weight = 0.7, 0.3

    # Path without constants.
    out_plain = jax.block_until_ready(
        custom_square_loss(x, y, None,
                           loss_weight=loss_weight, loss2_weight=loss2_weight))
    ref_plain = _reference(x, y, None, loss_weight, loss2_weight)

    # Path with constants.
    out_full = jax.block_until_ready(
        custom_square_loss(x, y, consts,
                           loss_weight=loss_weight, loss2_weight=loss2_weight))
    ref_full = _reference(x, y, consts, loss_weight, loss2_weight)

    assert jnp.allclose(out_plain, ref_plain, rtol=1e-5, atol=1e-5), (
        out_plain, ref_plain)
    assert jnp.allclose(out_full, ref_full, rtol=1e-5, atol=1e-5), (
        out_full, ref_full)

    print("KERNEL_OK")
</pallas_src>

<mosaic_0001>
module attributes {stable_mosaic.version = 11 : i64} {
  func.func @kernel(%arg0: i32, %arg1: i32, %arg2: memref<8x128xf32, #tpu.memory_space<vmem>>, %arg3: memref<8x128xf32, #tpu.memory_space<vmem>>, %arg4: memref<1x8x128xf32, #tpu.memory_space<vmem>>) attributes {dimension_semantics = [#tpu.dimension_semantics<parallel>, #tpu.dimension_semantics<arbitrary>], iteration_bounds = array<i64: 2, 1>, scalar_prefetch = 0 : i64, scratch_operands = 0 : i64, tpu.core_type = #tpu.core_type<tc>, window_params = [{transform_indices = @transform_0, window_bounds = array<i64: 8, 128>}, {transform_indices = @transform_1, window_bounds = array<i64: 8, 128>}, {transform_indices = @transform_2, window_bounds = array<i64: 1, 8, 128>}]} {
    %c0_i32 = arith.constant 0 : i32
    %0 = arith.cmpi eq, %arg1, %c0_i32 : i32
    %1 = arith.extui %0 : i1 to i32
    %c0_i32_0 = arith.constant 0 : i32
    %2 = arith.cmpi ne, %1, %c0_i32_0 : i32
    scf.if %2 {
      %cst_10 = arith.constant 0.000000e+00 : f32
      %13 = vector.broadcast %cst_10 : f32 to vector<1x8x128xf32>
      %c0_11 = arith.constant 0 : index
      %c0_12 = arith.constant 0 : index
      %c0_13 = arith.constant 0 : index
      %14 = vector.load %arg4[%c0_11, %c0_12, %c0_13] : memref<1x8x128xf32, #tpu.memory_space<vmem>>, vector<1x8x128xf32>
      tpu.vector_store %arg4[%c0_11, %c0_12, %c0_13], %13 {strides = array<i32>} : memref<1x8x128xf32, #tpu.memory_space<vmem>>, vector<1x8x128xf32>,
    } else {
    }
    %c0 = arith.constant 0 : index
    %c0_1 = arith.constant 0 : index
    %3 = vector.load %arg2[%c0, %c0_1] : memref<8x128xf32, #tpu.memory_space<vmem>>, vector<8x128xf32>
    %c0_2 = arith.constant 0 : index
    %c0_3 = arith.constant 0 : index
    %4 = vector.load %arg3[%c0_2, %c0_3] : memref<8x128xf32, #tpu.memory_space<vmem>>, vector<8x128xf32>
    %5 = arith.subf %3, %4 : vector<8x128xf32>
    %6 = arith.mulf %5, %5 : vector<8x128xf32>
    %7 = vector.shape_cast %6 : vector<8x128xf32> to vector<1x8x128xf32>
    %cst = arith.constant dense<0.000000e+00> : vector<8x128xf32>
    %8 = vector.multi_reduction <add>, %7, %cst [0] : vector<1x8x128xf32> to vector<8x128xf32>
    %c0_4 = arith.constant 0 : index
    %c0_5 = arith.constant 0 : index
    %c0_6 = arith.constant 0 : index
    %9 = vector.load %arg4[%c0_4, %c0_5, %c0_6] : memref<1x8x128xf32, #tpu.memory_space<vmem>>, vector<1x8x128xf32>
    %10 = vector.shape_cast %8 : vector<8x128xf32> to vector<1x8x128xf32>
    %11 = arith.addf %9, %10 : vector<1x8x128xf32>
    %c0_7 = arith.constant 0 : index
    %c0_8 = arith.constant 0 : index
    %c0_9 = arith.constant 0 : index
    %12 = vector.load %arg4[%c0_7, %c0_8, %c0_9] : memref<1x8x128xf32, #tpu.memory_space<vmem>>, vector<1x8x128xf32>
    tpu.vector_store %arg4[%c0_7, %c0_8, %c0_9], %11 {strides = array<i32>} : memref<1x8x128xf32, #tpu.memory_space<vmem>>, vector<1x8x128xf32>,
    return
  }
  func.func @transform_0(%arg0: i32, %arg1: i32) -> (i32, i32) {
    %c1_i32 = arith.constant 1 : i32
    %0 = arith.muli %arg0, %c1_i32 : i32
    %1 = arith.addi %0, %arg1 : i32
    %c1_i32_0 = arith.constant 1 : i32
    %2 = arith.minsi %1, %c1_i32_0 : i32
    %c0_i32 = arith.constant 0 : i32
    %c0_i32_1 = arith.constant 0 : i32
    return %2, %c0_i32 : i32, i32
  }
  func.func @transform_1(%arg0: i32, %arg1: i32) -> (i32, i32) {
    %c1_i32 = arith.constant 1 : i32
    %0 = arith.muli %arg0, %c1_i32 : i32
    %1 = arith.addi %0, %arg1 : i32
    %c1_i32_0 = arith.constant 1 : i32
    %2 = arith.minsi %1, %c1_i32_0 : i32
    %c0_i32 = arith.constant 0 : i32
    %c0_i32_1 = arith.constant 0 : i32
    return %2, %c0_i32 : i32, i32
  }
  func.func @transform_2(%arg0: i32, %arg1: i32) -> (i32, i32, i32) {
    %c0_i32 = arith.constant 0 : i32
    %c0_i32_0 = arith.constant 0 : i32
    %c0_i32_1 = arith.constant 0 : i32
    return %arg0, %c0_i32, %c0_i32_0 : i32, i32, i32
  }
}

</mosaic_0001>

<bundles_post_ra>
// kernel: tpu_custom_call.1
= control target key start
LH: loop header
LB: loop body
LE: loop exit
PB: predicated region body
PF: predicated region fallthrough
CT: control target
= control target key end

     0   :  { %7 = vsyncpa [#allocation3], 0  ;;  %s909_s0 = inlined_call_operand.hbm [shape: f32[16,128], index: 0, kind: input, shape index: {}]   ;;  %s910_s1 = inlined_call_operand.hbm [shape: f32[16,128], index: 1, kind: input, shape index: {}]   ;;  %s911_s2 = inlined_call_operand.hbm [shape: f32[2,8,128], index: 2, kind: output, shape index: {}]  }
   0x1   :  { %9 = vsyncpa [#allocation3 + $0x1], 0 }
   0x2   :  { %10 = vsyncpa [#allocation6], 0 }
   0x3   :  { %12 = vsyncpa [#allocation6 + $0x1], 0 }
   0x4   :  { %13 = vsyncpa [#allocation4], 0 }
   0x5   :  { %15 = vsyncpa [#allocation4 + $0x1], 0  ;;  %s658_s9 = smov 0   ;;  %s660_s10 = smov 0  }
   0x6   :  { %s662_s11 = smov 0   ;;  %s664_s12 = smov 0  }
   0x7   :  { %s666_s13 = smov 0   ;;  %s668_s14 = smov 0  }
   0x8   :  { %s670_s15 = smov 0   ;;  %s672_s16 = smov 0  }
   0x9   :  { %s674_s17 = smov 0  }
   0xa LB: > { %s360_s18 = sadd.s32 4294967295, %s638_s17   ;;  %s361_s19 = sadd.s32 4294967294, %s638_s17   ;;  %s638_s17 = sphi %s674_s17, %s21_s17   ;;  %s634_s16 = sphi %s672_s16, %s936_s16   ;;  %s630_s15 = sphi %s670_s15, %s935_s15   ;;  %s626_s14 = sphi %s668_s14, %s934_s14   ;;  %s622_s13 = sphi %s666_s13, %s933_s13   ;;  %s618_s12 = sphi %s664_s12, %s932_s12   ;;  %s614_s11 = sphi %s662_s11, %s931_s11   ;;  %s610_s10 = sphi %s660_s10, %s930_s10   ;;  %s606_s9 = sphi %s658_s9, %s929_s9  }
   0xb   : > { %s33_s20 = sadd.s32 1, %s634_s16  ;;  %p38_p0 = scmp.lt.s32.totalorder %s634_s16, 1 }
   0xc   : > { %p35_p1 = scmp.ge.s32.totalorder %s33_s20, 2  ;;  %s46_s21 = sadd.s32 1, %s626_s14 }
   0xd   : > { %s707_s22 = scalar_select %p38_p0, %s634_s16, 1 }
   0xe   : > { %s938_s20 = smov (%p35_p1, %s33_s20), 0  ;;  %p53_p2 = scmp.ne.s32.totalorder %s626_s14, %s622_s13 }
   0xf   : > { %p54_p3 = scmp.eq.s32.totalorder %s638_s17, 0  ;;  %p41_p4 = scmp.lt.s32.totalorder %s938_s20, 1 }
  0x10   : > { %p59_p5 = scmp.ne.s32.totalorder %s622_s13, %s618_s12  ;;  %p60_p7 = scmp.eq.s32.totalorder %s360_s18, 0 }
  0x11   : > { %p716_p6 = por %p54_p3, %p53_p2  ;;  %s101_s26 = ssub.s32 %s634_s16, %s938_s20 }
  0x12   : > { %s42_s24 = scalar_select %p41_p4, %s938_s20, 1 }
  0x13   : > { %p721_p8 = por %p60_p7, %p59_p5  ;;  %p102_p9 = scmp.eq.s32.totalorder %s101_s26, 0 }
  0x14   : > { %s43_s27 = ssub.s32 %s707_s22, %s42_s24  ;;  %s104_s28 = sadd.s32 1, %s614_s11 }
  0x15   : > { %s916_s25 = scalar_select %p721_p8, 1, 0 }
  0x16   : > { %p44_p10 = scmp.eq.s32.totalorder %s43_s27, 0  ;;  %p114_p11 = scmp.ne.s32.totalorder %s614_s11, %s610_s10 }
  0x17   : > { %s730_s29 = scalar_select %p102_p9, %s614_s11, %s104_s28  }
  0x18   : > { %s733_s30 = scalar_select %p44_p10, %s626_s14, %s46_s21  }
  0x19   : > { %p115_p12 = scmp.eq.s32.totalorder %s360_s18, 1  ;;  %p120_p13 = scmp.ne.s32.totalorder %s610_s10, %s606_s9 }
  0x1a   : > { %p121_p0 = scmp.eq.s32.totalorder %s361_s19, 1  ;;  %p393_p4 = scmp.lt.s32.totalorder %s638_s17, 2 }
  0x1b   : > { %p739_p1 = por %p115_p12, %p114_p11  ;;  %s750_s5 = sand.u32 1, %s626_s14  }
  0x1c   : > { %p744_p3 = por %p121_p0, %p120_p13  ;;  %s365_s6 = sshll.u32 %s707_s22, 7 }
  0x1d   : > { %s917_s3 = scalar_select %p739_p1, 1, 0 }
  0x1e   : > { %s918_s4 = scalar_select %p744_p3, 1, 0 }
  0x1f   : > { %s912_s7 = sshll.u32 %s750_s5, 3  ;;  %s759_s18 = scalar_lea.hbm %s909_s0, %s365_s6 }
  0x20   : > { %s145_s19 = scalar_lea.vmem [#allocation2], %s912_s7  ;;  %p765_p5 = pnand %p393_p4, %p716_p6 }
  0x21   : > { %s155_s21 = sshll.u32 %s145_s19, 4  ;;  %s142_s26 = scalar_lea.sflag [#allocation3], %s750_s5  ;;  %s769_s21 = int_to_ptr.vmem [resolvable:$true] %s155_s21 }
  0x22   : > { %s468_s27 = scalar_lea.hbm %s759_s18, 128  ;;  %p470_p11 = pneg %p765_p5 }
  0x23   : > { %p469_p10 = scmp.ne.s32.totalorder %s759_s18, %s468_s27  ;;  %s473_s8 = scalar_lea.hbm %s909_s0, 256 }
  0x24   : > { %p474_p6 = scmp.lt.u32.totalorder %s759_s18, %s909_s0  ;;  %p475_p0 = scmp.lt.u32.totalorder %s473_s8, %s468_s27 }
  0x25   : > { %p471_p12 = pnand %p470_p11, %p469_p10  ;;  %p477_p2 = scmp.lt.u32.totalorder %s468_s27, %s759_s18 }
  0x26   : > { %p476_p4 = por %p475_p0, %p474_p6 }
  0x27   : > { %p472_p13 = pneg %p471_p12 }
  0x28   : > { %p478_p7 = por %p477_p2, %p476_p4 }
  0x2a   : > { %p479_p9 = pnand %p478_p7, %p472_p13 }
  0x2c   : > { %482 = shalt.err (!%p479_p9)
}
  0x2d   : > { %s483_s7 = scalar_lea.vmem %s769_s21, 128  ;;  %s640_s23 = smov [#allocation2]  }
  0x2e   : > { %p484_p10 = scmp.ne.s32.totalorder %s769_s21, %s483_s7  ;;  %s488_s28 = sshll.u32 %s640_s23, 4  ;;  %s489_s28 = int_to_ptr.vmem [resolvable:$false] %s488_s28 }
  0x2f   : > { %s490_s12 = scalar_lea.vmem %s489_s28, 256  ;;  %p491_p1 = scmp.lt.s32.totalorder %s769_s21, %s489_s28 }
  0x30   : > { %p486_p12 = pnand %p484_p10, %p470_p11  ;;  %p492_p6 = scmp.lt.s32.totalorder %s490_s12, %s483_s7 }
  0x32   : > { %p487_p3 = pneg %p486_p12  ;;  %p493_p0 = por %p492_p6, %p491_p1 }
  0x34   : > { %p494_p2 = pnand %p493_p0, %p487_p3 }
  0x36   : > { %497 = shalt.err (!%p494_p2)
}
  0x37   : > { %385 = dma.hbm_to_vmem [thread:$0]  (!%p765_p5), %s759_s18, 128, %s769_s21, %s142_s26  }
  0x38   : > { %p920_p7 = scmp.lt.s32.totalorder %s638_s17, 3  ;;  %p921_p9 = scmp.ge.s32.totalorder %s638_s17, 1 }
  0x39   : > { %s812_s19 = scalar_lea.hbm %s910_s1, %s365_s6  ;;  %s923_s23 = sshll.u32 %s750_s5, 3 }
  0x3a   : > { %p803_p13 = pnand %p921_p9, %p920_p7  ;;  %s166_s28 = scalar_lea.vmem [#allocation5], %s923_s23 }
  0x3b   : > { %s176_s12 = sshll.u32 %s166_s28, 4  ;;  %s163_s18 = scalar_lea.sflag [#allocation6], %s750_s5  ;;  %s177_s12 = int_to_ptr.vmem [resolvable:$true] %s176_s12 }
  0x3c   : > { %s922_s27 = scalar_select %p803_p13, 1, 0 }
  0x3d   : > { %s498_s21 = scalar_lea.hbm %s812_s19, 128  ;;  %s503_s6 = scalar_lea.hbm %s910_s1, 256 }
  0x3e   : > { %p499_p1 = scmp.ne.s32.totalorder %s812_s19, %s498_s21  ;;  %p504_p10 = scmp.lt.u32.totalorder %s812_s19, %s910_s1 }
  0x3f   : > { %p505_p12 = scmp.lt.u32.totalorder %s503_s6, %s498_s21  ;;  %p507_p0 = scmp.lt.u32.totalorder %s498_s21, %s812_s19 }
  0x40   : > { %p501_p3 = pnand %p499_p1, %p470_p11 }
  0x41   : > { %p506_p6 = por %p505_p12, %p504_p10 }
  0x42   : > { %p502_p4 = pneg %p501_p3 }
  0x43   : > { %p508_p2 = por %p507_p0, %p506_p6 }
  0x45   : > { %p509_p7 = pnand %p508_p2, %p502_p4 }
  0x47   : > { %512 = shalt.err (!%p509_p7)
}
  0x48   : > { %s513_s5 = scalar_lea.vmem %s177_s12, 128  ;;  %s641_s23 = smov [#allocation5]  }
  0x49   : > { %p514_p9 = scmp.ne.s32.totalorder %s177_s12, %s513_s5  ;;  %s518_s28 = sshll.u32 %s641_s23, 4  ;;  %s519_s28 = int_to_ptr.vmem [resolvable:$false] %s518_s28 }
  0x4a   : > { %s520_s22 = scalar_lea.vmem %s519_s28, 256  ;;  %p521_p8 = scmp.lt.s32.totalorder %s177_s12, %s519_s28 }
  0x4b   : > { %p516_p1 = pnand %p514_p9, %p470_p11  ;;  %p522_p13 = scmp.lt.s32.totalorder %s520_s22, %s513_s5 }
  0x4d   : > { %p517_p3 = pneg %p516_p1  ;;  %p523_p10 = por %p522_p13, %p521_p8 }
  0x4f   : > { %p524_p12 = pnand %p523_p10, %p517_p3 }
  0x51   : > { %527 = shalt.err (!%p524_p12)
}
  0x52   : > { %388 = dma.hbm_to_vmem [thread:$0]  (!%p765_p5), %s812_s19, 128, %s177_s12, %s163_s18  }
  0x53   : > { %p924_p4 = scmp.ne.s32.totalorder %s922_s27, 0 }
  0x54   : > { %s187_s21 = sand.u32 (!%p924_p4), 1, %s622_s13   ;;  %p925_p11 = scmp.ne.s32.totalorder (!%p924_p4), %s916_s25, 0 }
  0x55   : > { %185 = sbr.rel (%p924_p4) target bundleno = 121 (0x79), region = 28  ;;  %s369_s26 = sshll.u32 (!%p924_p4), %s187_s21, 3 }
  0x56   : > { %s188_s6 = scalar_lea.sflag (!%p924_p4), [#allocation3], %s187_s21  ;;  %s191_s7 = scalar_lea.vmem (!%p924_p4), [#allocation2], %s369_s26 }
  0x5c   : > { %593 = dma.done.wait (%p925_p11), %s188_s6, 128  }
  0x5d   : > { %595 = vsyncadd (%p925_p11), %s188_s6, 4294967168  ;;  %s197_s8 = scalar_lea.sflag [#allocation6], %s187_s21  ;;  %s200_s5 = scalar_lea.vmem [#allocation5], %s369_s26 }
  0x5e   : > { %597 = dma.done.wait (%p925_p11), %s197_s8, 128  }
  0x5f   : > { %599 = vsyncadd (%p925_p11), %s197_s8, 4294967168  ;;  %s223_s24 = sand.u32 1, %s610_s10   ;;  %v237_v0 = vld [vmem:[%s191_s7] sm:$0xff]  ;;  %v238_v1 = vld [vmem:[%s200_s5] sm:$0xff]  ;;  %s373_s19 = sshll.u32 %s630_s15, 7 }
  0x60   : > { %s371_s27 = sshll.u32 %s223_s24, 3  ;;  %v239_v2 = vsub.f32 %v237_v0, %v238_v1  ;;  %s852_s22 = scalar_lea.hbm %s911_s2, %s373_s19 }
  0x61   : > { %s225_s12 = scalar_lea.vmem [#allocation7], %s371_s27  ;;  %s246_s25 = scalar_lea.sflag [#allocation4], %s223_s24 }
  0x62   : > { %s259_s18 = sshll.u32 %s225_s12, 4  ;;  %v240_v3 = vmul.f32 %v239_v2, %v239_v2  ;;  %p926_p5 = scmp.ne.s32.totalorder %s917_s3, 0  ;;  %s854_s18 = int_to_ptr.vmem [resolvable:$true] %s259_s18 }
  0x63   : > { %s528_s21 = scalar_lea.vmem %s854_s18, 128  ;;  %s642_s15 = smov [#allocation7]  }
  0x64   : > { %244 = vst [vmem:[%s225_s12] sm:$0xff] %v240_v3  ;;  %p529_p8 = scmp.ne.s32.totalorder %s854_s18, %s528_s21  ;;  %s532_s26 = sshll.u32 %s642_s15, 4  ;;  %s533_s26 = int_to_ptr.vmem [resolvable:$false] %s532_s26 }
  0x65   : > { %s534_s6 = scalar_lea.vmem %s533_s26, 256  ;;  %p535_p0 = scmp.lt.s32.totalorder %s854_s18, %s533_s26 }
  0x66   : > { %p530_p13 = pnand %p529_p8, %p926_p5  ;;  %p536_p2 = scmp.lt.s32.totalorder %s534_s6, %s528_s21 }
  0x68   : > { %p531_p6 = pneg %p530_p13  ;;  %p537_p7 = por %p536_p2, %p535_p0 }
  0x6a   : > { %p538_p9 = pnand %p537_p7, %p531_p6 }
  0x6c   : > { %541 = shalt.err (!%p538_p9)
}
  0x6d   : > { %s542_s7 = scalar_lea.hbm %s852_s22, 128  ;;  %s546_s24 = scalar_lea.hbm %s911_s2, 256 }
  0x6e   : > { %p543_p1 = scmp.ne.s32.totalorder %s852_s22, %s542_s7  ;;  %p547_p12 = scmp.lt.u32.totalorder %s852_s22, %s911_s2 }
  0x6f   : > { %p548_p4 = scmp.lt.u32.totalorder %s546_s24, %s542_s7  ;;  %p550_p8 = scmp.lt.u32.totalorder %s542_s7, %s852_s22 }
  0x70   : > { %p544_p3 = pnand %p543_p1, %p926_p5 }
  0x71   : > { %p549_p11 = por %p548_p4, %p547_p12 }
  0x72   : > { %p545_p10 = pneg %p544_p3 }
  0x73   : > { %p551_p13 = por %p550_p8, %p549_p11 }
  0x75   : > { %p552_p6 = pnand %p551_p13, %p545_p10 }
  0x77   : > { %555 = shalt.err (!%p552_p6)
}
  0x78   : > { %380 = dma.vmem_to_hbm [thread:$0]  (%p926_p5), %s854_s18, 128, %s852_s22, %s246_s25  }
  0x79 PF: > { %s271_s12 = sand.u32 1, %s606_s9   ;;  %p927_p0 = scmp.ne.s32.totalorder %s918_s4, 0 }
  0x7a   : > { %p928_p2 = scmp.ge.s32.totalorder %s638_s17, 2  ;;  %s272_s23 = scalar_lea.sflag [#allocation4], %s271_s12 }
  0x7c   : > { %p390_p7 = pnand %p928_p2, %p927_p0 }
  0x7e   : > { %601 = dma.done.wait (!%p390_p7), %s272_s23, 128  }
  0x7f   : > { %603 = vsyncadd (!%p390_p7), %s272_s23, 4294967168  ;;  %s21_s17 = sadd.s32 1, %s638_s17   ;;  %s929_s9 = smov %s610_s10 }
  0x80   : > { %p18_p9 = scmp.ge.s32.totalorder %s21_s17, 4   ;;  %s930_s10 = smov %s614_s11 }
  0x81   : > { %s931_s11 = smov %s730_s29  ;;  %s932_s12 = smov %s622_s13 }
  0x82   : > { %s933_s13 = smov %s626_s14  ;;  %s934_s14 = smov %s733_s30 }
  0x83   : > { %s935_s15 = smov %s634_s16  ;;  %s936_s16 = smov %s938_s20 }
  0x84   :  { %20 = sbr.rel (!%p18_p9) target bundleno = 10 (0xa), region = 90 }
  0x8b   :  { %277 = vsyncpa [#allocation3], 1 }
  0x8c   :  { %279 = vsyncpa [#allocation3 + $0x1], 1 }
  0x8d   :  { %280 = vsyncpa [#allocation6], 1 }
  0x8e   :  { %282 = vsyncpa [#allocation6 + $0x1], 1 }
  0x8f   :  { %283 = vsyncpa [#allocation4], 1 }
  0x90   :  { %285 = vsyncpa [#allocation4 + $0x1], 1 }

</bundles_post_ra>
